<compile_context>
chip_gen: v7x
topology: tpu7x:2x2x1
jax: 0.10.0
libtpu: 0.0.40
codegen_flags: <defaults>
</compile_context>

<pallas_src>
import functools

import jax
import jax.numpy as jnp
from jax.experimental import pallas as pl
from jax.experimental.pallas import tpu as pltpu


def _vmem_capacity_bytes():
    """Physical VMEM per TensorCore; conservative fallback if query fails."""
    try:
        return int(pltpu.get_tpu_info().vmem_capacity_bytes)
    except Exception:
        return 64 * 1024 * 1024  # v7x per-TC size; safe on every generation


_VMEM_CAP = _vmem_capacity_bytes()


def _round_up(a, b):
    return (a + b - 1) // b * b


def _sublane(itemsize):
    # sublane packing per element width: f32 -> 8, bf16 -> 16, int8/fp8 -> 32
    return {4: 8, 2: 16, 1: 32}.get(itemsize, 8)


def _auto_tile_rows(rows, C, itemsize, sublane, vmem_cap):
    """Largest roofline-friendly row tile that fits the chip's VMEM."""
    row_bytes = C * itemsize
    # Target ~4 MiB per block, capped so double-buffered in+out stays well
    # under physical VMEM (cap/8 per block -> <= cap/2 total with 4 buffers).
    block_budget = min(4 << 20, max(sublane * row_bytes, vmem_cap // 8))
    tr = max(sublane, (block_budget // row_bytes) // sublane * sublane)
    # Keep >= 2 grid steps when there is enough work so the ("parallel",)
    # grid axis can shard across both TensorCores on v7x.
    if rows > sublane:
        tr = min(tr, _round_up((rows + 1) // 2, sublane))
    return int(tr)


def _withbias_layernorm_kernel(x_ref, wb_ref, o_ref):
    # x_ref: (tile_rows, C); wb_ref: (2, C) f32 (row 0 = weight, row 1 = bias)
    x = x_ref[...].astype(jnp.float32)
    inv_c = jnp.float32(1.0 / x.shape[-1])
    # Single pass over x: the two reductions are independent (no serial mu dep).
    s1 = jnp.sum(x, axis=-1, keepdims=True)
    s2 = jnp.sum(x * x, axis=-1, keepdims=True)
    mu = s1 * inv_c
    var = jnp.maximum(s2 * inv_c - mu * mu, 0.0)  # population variance (/C)
    y = (x - mu) * jax.lax.rsqrt(var + 1e-5)
    w = wb_ref[0:1, :]
    b = wb_ref[1:2, :]
    o_ref[...] = (y * w + b).astype(o_ref.dtype)


@functools.partial(jax.jit, static_argnames=("tile_rows",))
def withbias_layernorm(x, weight, bias, *, tile_rows=None):
    """LayerNorm over the last axis with affine (weight, bias), eps=1e-5.

    Matches PyTorch WithBias_LayerNorm: population variance, f32 math.
    """
    orig_shape = x.shape
    C = int(orig_shape[-1])
    x2 = x.reshape(-1, C)
    R = int(x2.shape[0])

    itemsize = jnp.dtype(x.dtype).itemsize
    sublane = _sublane(itemsize)

    if tile_rows is None:
        tile_rows = _auto_tile_rows(R, C, itemsize, sublane, _VMEM_CAP)
    tile_rows = _round_up(int(tile_rows), sublane)

    grid = pl.cdiv(R, tile_rows)
    r_pad = grid * tile_rows
    if r_pad != R:
        # Zero row-padding instead of a divisibility assert; padded rows are
        # computed in fully dense tiles and sliced off afterwards.
        x2 = jnp.pad(x2, ((0, r_pad - R), (0, 0)))

    # Hoist weight/bias casts out of the hot loop and fuse them into one
    # constant-index (2, C) operand (single DMA descriptor, VMEM-resident).
    wb = jnp.stack(
        [weight.reshape(C).astype(jnp.float32),
         bias.reshape(C).astype(jnp.float32)]
    )

    # Explicit scoped-VMEM budget: 2x in block + 2x out block + wb + slack.
    block_bytes = tile_rows * C * itemsize
    needed = 4 * block_bytes + 2 * (2 * C * 4) + (4 << 20)
    vmem_limit = int(min(max(needed, 32 << 20), _VMEM_CAP - (4 << 20)))

    # TODO(synk): for C < 128 the lane dimension is under-filled; folding
    # multiple rows into the lane axis (segmented reduction) would make the
    # stores lane-dense, but is not needed for correctness.
    out = pl.pallas_call(
        _withbias_layernorm_kernel,
        out_shape=jax.ShapeDtypeStruct((r_pad, C), x.dtype),
        grid_spec=pltpu.PrefetchScalarGridSpec(
            num_scalar_prefetch=0,
            grid=(grid,),
            in_specs=[
                pl.BlockSpec((tile_rows, C), lambda i: (i, 0)),
                pl.BlockSpec((2, C), lambda i: (0, 0)),
            ],
            out_specs=pl.BlockSpec((tile_rows, C), lambda i: (i, 0)),
        ),
        compiler_params=pltpu.CompilerParams(
            dimension_semantics=("parallel",),
            vmem_limit_bytes=vmem_limit,
        ),
    )(x2, wb)

    if r_pad != R:
        out = out[:R]
    return out.reshape(orig_shape)


if __name__ == "__main__":
    def ref_ln(x, w, b):
        mu = jnp.mean(x, axis=-1, keepdims=True)
        var = jnp.mean((x - mu) ** 2, axis=-1, keepdims=True)
        return (x - mu) / jnp.sqrt(var + 1e-5) * w + b

    key = jax.random.PRNGKey(0)
    k1, k2, k3, k4 = jax.random.split(key, 4)

    # Case 1: module-default params (weight=ones, bias=zeros), (B, S, H)
    batch, seq, hidden = 2, 8, 32
    x1 = jax.random.normal(k1, (batch, seq, hidden), dtype=jnp.float32)
    w1 = jnp.ones((hidden,), dtype=jnp.float32)
    b1 = jnp.zeros((hidden,), dtype=jnp.float32)
    o1 = jax.block_until_ready(withbias_layernorm(x1, w1, b1))
    assert jnp.allclose(o1, ref_ln(x1, w1, b1), atol=1e-5, rtol=1e-5)

    # Case 2: non-divisible row count + non-trivial affine (exercises the
    # cdiv + zero-padding path and the (2, C) fused weight/bias operand).
    C2 = 256
    x2 = jax.random.normal(k2, (3, 17, C2), dtype=jnp.float32)
    w2 = jax.random.normal(k3, (C2,), dtype=jnp.float32)
    b2 = jax.random.normal(k4, (C2,), dtype=jnp.float32)
    o2 = jax.block_until_ready(withbias_layernorm(x2, w2, b2))
    assert jnp.allclose(o2, ref_ln(x2, w2, b2), atol=1e-4, rtol=1e-4)

    print("KERNEL_OK")
</pallas_src>

<mosaic_0001>
module attributes {stable_mosaic.version = 11 : i64} {
  func.func @_withbias_layernorm_kernel(%arg0: i32, %arg1: memref<8x32xf32, #tpu.memory_space<vmem>>, %arg2: memref<2x32xf32, #tpu.memory_space<vmem>>, %arg3: memref<8x32xf32, #tpu.memory_space<vmem>>) attributes {dimension_semantics = [#tpu.dimension_semantics<parallel>], iteration_bounds = array<i64: 2>, scalar_prefetch = 0 : i64, scratch_operands = 0 : i64, tpu.core_type = #tpu.core_type<tc>, window_params = [{transform_indices = @transform_0, window_bounds = array<i64: 8, 32>}, {pipeline_mode = #tpu.pipeline_mode<synchronous>, transform_indices = @transform_1, window_bounds = array<i64: 2, 32>}, {transform_indices = @transform_2, window_bounds = array<i64: 8, 32>}]} {
    %c0 = arith.constant 0 : index
    %c0_0 = arith.constant 0 : index
    %0 = vector.load %arg1[%c0, %c0_0] : memref<8x32xf32, #tpu.memory_space<vmem>>, vector<8x32xf32>
    %cst = arith.constant dense<0.000000e+00> : vector<8xf32>
    %1 = vector.multi_reduction <add>, %0, %cst [1] : vector<8x32xf32> to vector<8xf32>
    %2 = vector.shape_cast %1 : vector<8xf32> to vector<8x1xf32>
    %3 = arith.mulf %0, %0 : vector<8x32xf32>
    %cst_1 = arith.constant dense<0.000000e+00> : vector<8xf32>
    %4 = vector.multi_reduction <add>, %3, %cst_1 [1] : vector<8x32xf32> to vector<8xf32>
    %5 = vector.shape_cast %4 : vector<8xf32> to vector<8x1xf32>
    %cst_2 = arith.constant 3.125000e-02 : f32
    %6 = vector.broadcast %cst_2 : f32 to vector<8x1xf32>
    %7 = arith.mulf %2, %6 : vector<8x1xf32>
    %cst_3 = arith.constant 3.125000e-02 : f32
    %8 = vector.broadcast %cst_3 : f32 to vector<8x1xf32>
    %9 = arith.mulf %5, %8 : vector<8x1xf32>
    %10 = arith.mulf %7, %7 : vector<8x1xf32>
    %11 = arith.subf %9, %10 : vector<8x1xf32>
    %cst_4 = arith.constant 0.000000e+00 : f32
    %12 = vector.broadcast %cst_4 : f32 to vector<8x1xf32>
    %13 = arith.maximumf %11, %12 : vector<8x1xf32>
    %14 = vector.broadcast %7 : vector<8x1xf32> to vector<8x32xf32>
    %15 = arith.subf %0, %14 : vector<8x32xf32>
    %cst_5 = arith.constant 9.99999974E-6 : f32
    %16 = vector.broadcast %cst_5 : f32 to vector<8x1xf32>
    %17 = arith.addf %13, %16 : vector<8x1xf32>
    %18 = math.rsqrt %17 : vector<8x1xf32>
    %19 = vector.broadcast %18 : vector<8x1xf32> to vector<8x32xf32>
    %20 = arith.mulf %15, %19 : vector<8x32xf32>
    %c0_6 = arith.constant 0 : index
    %c0_7 = arith.constant 0 : index
    %21 = vector.load %arg2[%c0_6, %c0_7] : memref<2x32xf32, #tpu.memory_space<vmem>>, vector<1x32xf32>
    %c1 = arith.constant 1 : index
    %c0_8 = arith.constant 0 : index
    %22 = vector.load %arg2[%c1, %c0_8] : memref<2x32xf32, #tpu.memory_space<vmem>>, vector<1x32xf32>
    %23 = vector.broadcast %21 : vector<1x32xf32> to vector<8x32xf32>
    %24 = arith.mulf %20, %23 : vector<8x32xf32>
    %25 = vector.broadcast %22 : vector<1x32xf32> to vector<8x32xf32>
    %26 = arith.addf %24, %25 : vector<8x32xf32>
    %c0_9 = arith.constant 0 : index
    %c0_10 = arith.constant 0 : index
    %27 = vector.load %arg3[%c0_9, %c0_10] : memref<8x32xf32, #tpu.memory_space<vmem>>, vector<8x32xf32>
    tpu.vector_store %arg3[%c0_9, %c0_10], %26 {strides = array<i32>} : memref<8x32xf32, #tpu.memory_space<vmem>>, vector<8x32xf32>,
    return
  }
  func.func @transform_0(%arg0: i32) -> (i32, i32) {
    %c0_i32 = arith.constant 0 : i32
    %c0_i32_0 = arith.constant 0 : i32
    return %arg0, %c0_i32 : i32, i32
  }
  func.func @transform_1(%arg0: i32) -> (i32, i32) {
    %c0_i32 = arith.constant 0 : i32
    %c0_i32_0 = arith.constant 0 : i32
    %c0_i32_1 = arith.constant 0 : i32
    return %c0_i32, %c0_i32_0 : i32, i32
  }
  func.func @transform_2(%arg0: i32) -> (i32, i32) {
    %c0_i32 = arith.constant 0 : i32
    %c0_i32_0 = arith.constant 0 : i32
    return %arg0, %c0_i32 : i32, i32
  }
}

</mosaic_0001>

<bundles_post_ra>
// kernel: withbias_layernorm.1
= control target key start
LH: loop header
LB: loop body
LE: loop exit
PB: predicated region body
PF: predicated region fallthrough
CT: control target
= control target key end

     0   :  { %7 = vsyncpa [#allocation3], 0  ;;  %s621_s0 = inlined_call_operand.hbm [shape: f32[16,32], index: 0, kind: input, shape index: {}]   ;;  %s622_s1 = inlined_call_operand.vmem [shape: f32[2,32], index: 1, kind: input, shape index: {}]   ;;  %s623_s2 = inlined_call_operand.hbm [shape: f32[16,32], index: 2, kind: output, shape index: {}]  }
   0x1   :  { %9 = vsyncpa [#allocation3 + $0x1], 0 }
   0x2   :  { %10 = vsyncpa [#allocation4], 0 }
   0x3   :  { %12 = vsyncpa [#allocation4 + $0x1], 0  ;;  %s451_s9 = smov 0   ;;  %s453_s10 = smov 0  }
   0x4   :  { %s455_s11 = smov 0   ;;  %s457_s12 = smov 0  }
   0x5 LB: > { %s472_s13 = sadd.s32 4294967295, %s432_s12   ;;  %s274_s14 = sadd.s32 4294967294, %s432_s12   ;;  %s432_s12 = sphi %s457_s12, %s638_s12   ;;  %s428_s11 = sphi %s455_s11, %s637_s11   ;;  %s424_s10 = sphi %s453_s10, %s636_s10   ;;  %s420_s9 = sphi %s451_s9, %s635_s9  }
   0x6   : > { %s476_s15 = sadd.s32 1, %s432_s12   ;;  %s25_s16 = sadd.s32 1, %s428_s11 }
   0x7   : > { %s22_s17 = ssub.s32 %s432_s12, %s476_s15  ;;  %p32_p0 = scmp.ne.s32.totalorder %s428_s11, %s424_s10 }
   0x8   : > { %p23_p1 = scmp.eq.s32.totalorder %s22_s17, 0  ;;  %p33_p2 = scmp.eq.s32.totalorder %s432_s12, 0 }
   0x9   : > { %p38_p3 = scmp.ne.s32.totalorder %s424_s10, %s420_s9  ;;  %p39_p4 = scmp.eq.s32.totalorder %s472_s13, 0 }
   0xa   : > { %s488_s18 = scalar_select %p23_p1, %s428_s11, %s25_s16  }
   0xb   : > { %p490_p5 = por %p33_p2, %p32_p0  ;;  %p494_p6 = por %p39_p4, %p38_p3 }
   0xc   : > { %p83_p7 = scmp.eq.s32.totalorder %s472_s13, 1  ;;  %p89_p8 = scmp.eq.s32.totalorder %s274_s14, 1 }
   0xd   : > { %p300_p10 = scmp.lt.s32.totalorder %s432_s12, 2  ;;  %s112_s23 = sand.u32 1, %s428_s11  }
   0xe   : > { %p501_p11 = por %p83_p7, %p32_p0  ;;  %p505_p12 = por %p89_p8, %p38_p3 }
   0xf   : > { %s278_s24 = sshll.u32 %s432_s12, 7  ;;  %s277_s25 = sshll.u32 %s112_s23, 3 }
  0x10   : > { %s627_s21 = scalar_select %p501_p11, 1, 0 }
  0x11   : > { %s628_s22 = scalar_select %p505_p12, 1, 0 }
  0x12   : > { %s514_s28 = scalar_lea.hbm %s621_s0, %s278_s24  ;;  %s116_s29 = scalar_lea.vmem [#allocation2], %s277_s25 }
  0x13   : > { %s123_s30 = sshll.u32 %s116_s29, 4  ;;  %p518_p13 = pnand %p300_p10, %p490_p5  ;;  %s522_s30 = int_to_ptr.vmem [resolvable:$true] %s123_s30 }
  0x14   : > { %s113_s4 = scalar_lea.sflag [#allocation3], %s112_s23  ;;  %s336_s5 = scalar_lea.hbm %s514_s28, 128 }
  0x15   : > { %p337_p2 = scmp.ne.s32.totalorder %s514_s28, %s336_s5  ;;  %p338_p3 = pneg %p518_p13 }
  0x16   : > { %s341_s8 = scalar_lea.hbm %s621_s0, 256  ;;  %p342_p5 = scmp.lt.u32.totalorder %s514_s28, %s621_s0 }
  0x17   : > { %p339_p4 = pnand %p338_p3, %p337_p2  ;;  %p343_p8 = scmp.lt.u32.totalorder %s341_s8, %s336_s5 }
  0x18   : > { %p345_p9 = scmp.lt.u32.totalorder %s336_s5, %s514_s28 }
  0x19   : > { %p340_p7 = pneg %p339_p4  ;;  %p344_p10 = por %p343_p8, %p342_p5 }
  0x1b   : > { %p346_p0 = por %p345_p9, %p344_p10 }
  0x1d   : > { %p347_p1 = pnand %p346_p0, %p340_p7 }
  0x1f   : > { %350 = shalt.err (!%p347_p1)
}
  0x20   : > { %s351_s17 = scalar_lea.vmem %s522_s30, 128  ;;  %s434_s19 = smov [#allocation2]  }
  0x21   : > { %p352_p2 = scmp.ne.s32.totalorder %s522_s30, %s351_s17  ;;  %s356_s23 = sshll.u32 %s434_s19, 4  ;;  %s357_s23 = int_to_ptr.vmem [resolvable:$false] %s356_s23 }
  0x22   : > { %s358_s24 = scalar_lea.vmem %s357_s23, 256  ;;  %p359_p11 = scmp.lt.s32.totalorder %s522_s30, %s357_s23 }
  0x23   : > { %p354_p4 = pnand %p352_p2, %p338_p3  ;;  %p360_p5 = scmp.lt.s32.totalorder %s358_s24, %s351_s17 }
  0x25   : > { %p355_p12 = pneg %p354_p4  ;;  %p361_p8 = por %p360_p5, %p359_p11 }
  0x27   : > { %p362_p9 = pnand %p361_p8, %p355_p12 }
  0x29   : > { %365 = shalt.err (!%p362_p9)
}
  0x2a   : > { %295 = dma.hbm_to_vmem [thread:$0]  (!%p518_p13), %s514_s28, 128, %s522_s30, %s113_s4  }
  0x2b   : > { %p630_p0 = scmp.lt.s32.totalorder %s432_s12, 3  ;;  %p631_p1 = scmp.ge.s32.totalorder %s432_s12, 1 }
  0x2d   : > { %p129_p3 = pnand %p631_p1, %p630_p0 }
  0x2e   : > { %s556_s25 = sand.u32 (!%p129_p3), 1, %s424_s10  }
  0x2f   : > { %132 = sbr.rel (%p129_p3) target bundleno = 242 (0xf2), region = 28  ;;  %s280_s26 = sshll.u32 (!%p129_p3), %s556_s25, 3 }
  0x30   : > { %s135_s27 = scalar_lea.sflag (!%p129_p3), [#allocation3], %s556_s25  ;;  %s138_s29 = scalar_lea.vmem (!%p129_p3), [#allocation2], %s280_s26 }
  0x36   : > { %411 = dma.done.wait (%p494_p6), %s135_s27, 128  }
  0x37   : > { %413 = vsyncadd (%p494_p6), %s135_s27, 4294967168  ;;  %vm160_vm0 = vcmask 261120   ;;  %v159_v0 = vld [vmem:[%s138_s29] sm:$0xff]  ;;  %s285_s4 = sshll.u32 %s472_s13, 7  ;;  %s158_s5 = scalar_lea.vmem [#allocation5], %s280_s26 }
  0x38   : > { %v161_v1 = vsel %vm160_vm0, %v159_v0, 0.0  ;;  %v164_v2 = vmul.f32 %v159_v0, %v159_v0  ;;  %v282_v14 = vld [vmem:[%s622_s1] ss:$0 sm:$0xff]  ;;  %v283_v16 = vld [vmem:[%s622_s1 + $0x1] ss:$0 sm:$0xff]  ;;  %s204_s6 = sshll.u32 %s158_s5, 4  ;;  %s576_s14 = scalar_lea.hbm %s623_s2, %s285_s4  ;;  %s578_s6 = int_to_ptr.vmem [resolvable:$true] %s204_s6 }
  0x39   : > { %162 = vadd.xlane.f32.xlu0 %v161_v1  ;;  %s191_s16 = scalar_lea.sflag [#allocation4], %s556_s25  ;;  %s366_s17 = scalar_lea.vmem %s578_s6, 128 }
  0x3a   : > { %v165_v3 = vsel %vm160_vm0, %v164_v2, 0.0  ;;  %p367_p6 = scmp.ne.s32.totalorder %s578_s6, %s366_s17  ;;  %p632_p11 = scmp.ne.s32.totalorder %s627_s21, 0 }
  0x3b   : > { %s435_s13 = smov [#allocation5]  }
  0x3c   : > { %p368_p12 = pnand %p367_p6, %p632_p11  ;;  %s370_s19 = sshll.u32 %s435_s13, 4  ;;  %s371_s19 = int_to_ptr.vmem [resolvable:$false] %s370_s19 }
  0x3d   : > { %166 = vadd.xlane.f32.xlu0 %v165_v3  ;;  %s372_s23 = scalar_lea.vmem %s371_s19, 256  ;;  %p373_p7 = scmp.lt.s32.totalorder %s578_s6, %s371_s19 }
  0x3e   : > { %p369_p13 = pneg %p368_p12  ;;  %p374_p10 = scmp.lt.s32.totalorder %s372_s23, %s366_s17 }
  0x40   : > { %p375_p2 = por %p374_p10, %p373_p7 }
  0x42   : > { %p376_p4 = pnand %p375_p2, %p369_p13 }
  0xc6   : > { %v163_v4 = vpop.xlane.xlu0 %162 }
  0xc7   : > { %v168_v5 = vmul.f32 0.03125, %v163_v4 }
  0xc9   : > { %v170_v7 = vmul.f32 %v168_v5, %v168_v5  ;;  %v173_v12 = vsub.f32 %v159_v0, %v168_v5 }
  0xca   : > { %v167_v6 = vpop.xlane.xlu0 %166 }
  0xcb   : > { %v169_v8 = vmul.f32 0.03125, %v167_v6 }
  0xcd   : > { %v171_v9 = vsub.f32 %v169_v8, %v170_v7 }
  0xcf   : > { %v172_v10 = vmax.f32 %v171_v9, 0.0 }
  0xd1   : > { %v174_v11 = vadd.f32 1e-05, %v172_v10 }
  0xd3   : > { %334 = vrsqrt.f32 %v174_v11 }
  0xdd   : > { %v335_v13 = vpop.eup %334 }
  0xde   : > { %v176_v15 = vmul.f32 %v335_v13, %v173_v12 }
  0xe0   : > { %v183_v17 = vmul.f32 %v282_v14, %v176_v15 }
  0xe2   : > { %v188_v18 = vadd.f32 %v283_v16, %v183_v17 }
  0xe4   : > { %189 = vst.msk [vmem:[%s158_s5] sm:$0xff] %vm160_vm0, %v188_v18 }
  0xe5   : > { %379 = shalt.err (!%p376_p4)
}
  0xe6   : > { %s380_s24 = scalar_lea.hbm %s576_s14, 128  ;;  %s384_s27 = scalar_lea.hbm %s623_s2, 256 }
  0xe7   : > { %p381_p5 = scmp.ne.s32.totalorder %s576_s14, %s380_s24  ;;  %p385_p0 = scmp.lt.u32.totalorder %s576_s14, %s623_s2 }
  0xe8   : > { %p386_p1 = scmp.lt.u32.totalorder %s384_s27, %s380_s24  ;;  %p388_p6 = scmp.lt.u32.totalorder %s380_s24, %s576_s14 }
  0xe9   : > { %p382_p8 = pnand %p381_p5, %p632_p11 }
  0xea   : > { %p387_p3 = por %p386_p1, %p385_p0 }
  0xeb   : > { %p383_p9 = pneg %p382_p8 }
  0xec   : > { %p389_p12 = por %p388_p6, %p387_p3 }
  0xee   : > { %p390_p13 = pnand %p389_p12, %p383_p9 }
  0xf0   : > { %393 = shalt.err (!%p390_p13)
}
  0xf1   : > { %290 = dma.vmem_to_hbm [thread:$0]  (%p632_p11), %s578_s6, 128, %s576_s14, %s191_s16  }
  0xf2 PF: > { %s216_s28 = sand.u32 1, %s420_s9   ;;  %p633_p7 = scmp.ne.s32.totalorder %s628_s22, 0 }
  0xf3   : > { %p634_p10 = scmp.ge.s32.totalorder %s432_s12, 2  ;;  %s217_s30 = scalar_lea.sflag [#allocation4], %s216_s28 }
  0xf5   : > { %p297_p2 = pnand %p634_p10, %p633_p7 }
  0xf7   : > { %415 = dma.done.wait (!%p297_p2), %s217_s30, 128  }
  0xf8   : > { %417 = vsyncadd (!%p297_p2), %s217_s30, 4294967168  ;;  %p15_p4 = scmp.ge.s32.totalorder %s476_s15, 4   ;;  %s635_s9 = smov %s424_s10 }
  0xf9   : > { %s636_s10 = smov %s428_s11  ;;  %s637_s11 = smov %s488_s18 }
  0xfa   : > { %s638_s12 = smov %s476_s15  ;;  %17 = sbr.rel (!%p15_p4) target bundleno = 5 (0x5), region = 73 }
 0x101   :  { %222 = vsyncpa [#allocation3], 1 }
 0x102   :  { %224 = vsyncpa [#allocation3 + $0x1], 1 }
 0x103   :  { %225 = vsyncpa [#allocation4], 1 }
 0x104   :  { %227 = vsyncpa [#allocation4 + $0x1], 1 }

</bundles_post_ra>
